<compile_context>
chip_gen: v6e
topology: v6e:2x2x1
jax: 0.10.0
libtpu: 0.0.40
codegen_flags: <defaults>
</compile_context>

<pallas_src>
import jax
import jax.numpy as jnp
from jax.experimental import pallas as pl
from jax.experimental.pallas import tpu as pltpu

_MiB = 1024 * 1024


def _copy_tile_kernel(x_ref, o_ref):
    # (TB, TN) lane-dense tile: pure identity copy. Exists only as a fusion
    # site; the reshape itself is metadata-only and done outside the kernel.
    o_ref[...] = x_ref[...]


def _sublane_granularity(dtype):
    # Rows per fully-packed sublane group: 8 for 32-bit, 16 for bf16, 32 for int8/fp8.
    itemsize = jnp.dtype(dtype).itemsize
    return max(8, 32 // max(1, itemsize))


def _default_vmem_budget_bytes():
    # Budget for live tiles (2 in + 2 out, double-buffered). Stays under v5e's
    # 16 MiB scoped default fallback and well under v7x's 64 MiB physical VMEM.
    try:
        cap = int(pltpu.get_tpu_info().vmem_capacity_bytes)
        return int(min(max(cap // 8, 8 * _MiB), 32 * _MiB))
    except Exception:
        return 16 * _MiB


def unflatten_reference(x, dim1, dim2):
    """Production path: row-major reshape is metadata-only (zero HBM traffic)."""
    B, N = x.shape
    return jnp.reshape(x, (B, N // (dim1 * dim2), dim1, dim2))


def _pick_tiles(B, N, dtype, vmem_budget_bytes):
    """Return (TB, TN) tile sizes, or None if no clean tiling exists."""
    itemsize = jnp.dtype(dtype).itemsize
    g = _sublane_granularity(dtype)
    per_tile_budget = max(vmem_budget_bytes // 4, 1)  # 2 in + 2 out live buffers

    # --- row tile ---
    if B <= g:
        TB = B  # block dim == full array dim: (8,128) rule trivially satisfied
    else:
        TB = (min(B, 4096) // g) * g
        while TB >= g and B % TB != 0:
            TB -= g
        if TB < g:
            return None
        # Prefer >=4 row groups so the grid never collapses to a single step.
        while TB > g and B // TB < 4 and (TB // 2) % g == 0 and B % (TB // 2) == 0:
            TB //= 2
    row_steps = B // TB

    # --- column tile ---
    # Lane-dense candidates: multiples of 128 dividing N, largest first, but
    # guaranteeing >=4 total grid steps so dual-TC sharding / DMA overlap engage.
    candidates = [tn for tn in range(2048, 127, -128) if tn <= N and N % tn == 0]
    TN = None
    for tn in candidates:
        if TB * tn * itemsize > per_tile_budget:
            continue
        if row_steps * (N // tn) >= 4 or tn == candidates[-1]:
            TN = tn
            break
    if TN is None:
        # No clean multiple-of-128 split: use full width (block dim == array dim).
        if TB * N * itemsize > per_tile_budget:
            return None
        TN = N
    return TB, TN


def unflatten(x, dim1, dim2, *, use_pallas=False, donate_input=False,
              vmem_budget_bytes=None):
    """UnFlatten: x (B, N) -> (B, N//(dim1*dim2), dim1, dim2)."""
    B, N = x.shape
    hw = dim1 * dim2
    assert N % hw == 0, "flat feature dim must be divisible by dim1*dim2"
    C = N // hw

    if not use_pallas:
        # Recommended path: free metadata-only reshape.
        return unflatten_reference(x, dim1, dim2)

    if vmem_budget_bytes is None:
        vmem_budget_bytes = _default_vmem_budget_bytes()

    tiles = _pick_tiles(B, N, x.dtype, vmem_budget_bytes)
    if tiles is None:
        # No clean tiling -> use the free reshape instead of a bad kernel.
        return unflatten_reference(x, dim1, dim2)
    TB, TN = tiles
    itemsize = jnp.dtype(x.dtype).itemsize

    extra_kwargs = {}
    if donate_input:
        # Only correct as an optimization if the caller actually donates x
        # (jit donate_argnums); otherwise XLA adds a defensive copy of x.
        extra_kwargs["input_output_aliases"] = {0: 0}

    flat = pl.pallas_call(
        _copy_tile_kernel,
        out_shape=jax.ShapeDtypeStruct((B, N), x.dtype),
        grid_spec=pltpu.PrefetchScalarGridSpec(
            num_scalar_prefetch=0,
            grid=(B // TB, N // TN),
            in_specs=[pl.BlockSpec((TB, TN), lambda i, j: (i, j))],
            out_specs=pl.BlockSpec((TB, TN), lambda i, j: (i, j)),
        ),
        compiler_params=pltpu.CompilerParams(
            dimension_semantics=("parallel", "parallel"),
            vmem_limit_bytes=int(vmem_budget_bytes + 4 * _MiB),
        ),
        cost_estimate=pl.CostEstimate(
            flops=0,
            transcendentals=0,
            bytes_accessed=2 * B * N * itemsize,
        ),
        **extra_kwargs,
    )(x)

    # Metadata-only reshape (glue): split N -> (C, dim1, dim2).
    return flat.reshape(B, C, dim1, dim2)


if __name__ == "__main__":
    key = jax.random.PRNGKey(0)

    B, C, dim1, dim2 = 2, 4, 16, 16
    N = C * dim1 * dim2
    x = jax.random.normal(key, (B, N), dtype=jnp.float32)

    # Reference: exactly what torch's reshape(B, -1, dim1, dim2) does.
    ref = jnp.reshape(x, (B, -1, dim1, dim2))

    # Production default: metadata-only reshape (zero HBM traffic).
    out_free = jax.block_until_ready(unflatten(x, dim1, dim2))

    # Pallas copy-kernel path (kept as a fusion site / data-movement demo).
    out_pallas = jax.block_until_ready(unflatten(x, dim1, dim2, use_pallas=True))

    assert out_free.shape == (B, C, dim1, dim2), out_free.shape
    assert out_pallas.shape == (B, C, dim1, dim2), out_pallas.shape
    assert out_pallas.dtype == x.dtype
    assert bool(jnp.array_equal(out_free, ref)), "reshape path mismatch vs reference"
    assert bool(jnp.array_equal(out_pallas, ref)), "pallas path mismatch vs reference"

    print("KERNEL_OK")
</pallas_src>

<mosaic_0001>
module attributes {stable_mosaic.version = 11 : i64} {
  func.func @_copy_tile_kernel(%arg0: i32, %arg1: i32, %arg2: memref<2x256xf32, #tpu.memory_space<vmem>>, %arg3: memref<2x256xf32, #tpu.memory_space<vmem>>) attributes {dimension_semantics = [#tpu.dimension_semantics<parallel>, #tpu.dimension_semantics<parallel>], iteration_bounds = array<i64: 1, 4>, scalar_prefetch = 0 : i64, scratch_operands = 0 : i64, tpu.core_type = #tpu.core_type<tc>, window_params = [{transform_indices = @transform_0, window_bounds = array<i64: 2, 256>}, {transform_indices = @transform_1, window_bounds = array<i64: 2, 256>}]} {
    %c0 = arith.constant 0 : index
    %c0_0 = arith.constant 0 : index
    %0 = vector.load %arg2[%c0, %c0_0] : memref<2x256xf32, #tpu.memory_space<vmem>>, vector<2x256xf32>
    %c0_1 = arith.constant 0 : index
    %c0_2 = arith.constant 0 : index
    %1 = vector.load %arg3[%c0_1, %c0_2] : memref<2x256xf32, #tpu.memory_space<vmem>>, vector<2x256xf32>
    tpu.vector_store %arg3[%c0_1, %c0_2], %0 {strides = array<i32>} : memref<2x256xf32, #tpu.memory_space<vmem>>, vector<2x256xf32>,
    return
  }
  func.func @transform_0(%arg0: i32, %arg1: i32) -> (i32, i32) {
    %c0_i32 = arith.constant 0 : i32
    return %arg0, %arg1 : i32, i32
  }
  func.func @transform_1(%arg0: i32, %arg1: i32) -> (i32, i32) {
    %c0_i32 = arith.constant 0 : i32
    return %arg0, %arg1 : i32, i32
  }
}

</mosaic_0001>

<bundles_post_ra>
// kernel: tpu_custom_call.1
= control target key start
LH: loop header
LB: loop body
LE: loop exit
PB: predicated region body
PF: predicated region fallthrough
CT: control target
= control target key end

     0   :  { %6 = vsyncpa [#allocation3], 0  ;;  %s595_s0 = inlined_call_operand.hbm [shape: f32[2,1024], index: 0, kind: input, shape index: {}]   ;;  %s596_s1 = inlined_call_operand.hbm [shape: f32[2,1024], index: 1, kind: output, shape index: {}]  }
   0x1   :  { %8 = vsyncpa [#allocation3 + $0x1], 0 }
   0x2   :  { %9 = vsyncpa [#allocation4], 0 }
   0x3   :  { %11 = vsyncpa [#allocation4 + $0x1], 0  ;;  %s457_s6 = smov 0   ;;  %s459_s7 = smov 0  }
   0x4   :  { %s461_s8 = smov 0   ;;  %s463_s9 = smov 0  }
   0x5   :  { %s465_s10 = smov 0   ;;  %s467_s11 = smov 0  }
   0x6 LB: > { %s256_s12 = sadd.s32 4294967295, %s443_s11   ;;  %s257_s13 = sadd.s32 4294967294, %s443_s11   ;;  %s443_s11 = sphi %s467_s11, %s17_s11   ;;  %s439_s10 = sphi %s465_s10, %s607_s10   ;;  %s435_s9 = sphi %s463_s9, %s606_s9   ;;  %s431_s8 = sphi %s461_s8, %s605_s8   ;;  %s427_s7 = sphi %s459_s7, %s604_s7   ;;  %s423_s6 = sphi %s457_s6, %s603_s6  }
   0x7   : > { %s26_s14 = sadd.s32 1, %s439_s10  ;;  %s38_s15 = sadd.s32 1, %s431_s8 }
   0x8   : > { %p27_p0 = scmp.ge.s32.totalorder %s26_s14, 4  ;;  %p45_p1 = scmp.ne.s32.totalorder %s431_s8, %s427_s7 }
   0x9   : > { %p46_p2 = scmp.eq.s32.totalorder %s443_s11, 0  ;;  %p51_p3 = scmp.ne.s32.totalorder %s427_s7, %s423_s6 }
   0xa   : > { %s609_s14 = smov (%p27_p0, %s26_s14), 0  ;;  %p52_p5 = scmp.eq.s32.totalorder %s256_s12, 0 }
   0xb   : > { %p498_p4 = por %p46_p2, %p45_p1  ;;  %s34_s17 = ssub.s32 %s439_s10, %s609_s14 }
   0xc   : > { %p77_p6 = scmp.eq.s32.totalorder %s256_s12, 3  ;;  %p36_p7 = scmp.eq.s32.totalorder %s34_s17, 0 }
   0xd   : > { %p504_p8 = por %p52_p5, %p51_p3  ;;  %p83_p10 = scmp.eq.s32.totalorder %s257_s13, 3 }
   0xe   : > { %p508_p9 = por %p77_p6, %p45_p1  ;;  %p285_p12 = scmp.lt.s32.totalorder %s443_s11, 4 }
   0xf   : > { %s513_s20 = scalar_select %p36_p7, %s431_s8, %s38_s15  }
  0x10   : > { %p515_p11 = por %p83_p10, %p51_p3  ;;  %s103_s22 = sand.u32 1, %s431_s8  }
  0x11   : > { %s260_s23 = sshll.u32 %s103_s22, 2  ;;  %s271_s24 = sshll.u32 %s439_s10, 6 }
  0x12   : > { %s600_s21 = scalar_select %p515_p11, 1, 0 }
  0x13   : > { %s115_s27 = scalar_lea.hbm %s595_s0, %s271_s24  ;;  %s107_s28 = scalar_lea.vmem [#allocation2], %s260_s23 }
  0x14   : > { %s117_s29 = sshll.u32 %s107_s28, 4  ;;  %p527_p13 = pnand %p285_p12, %p498_p4  ;;  %s118_s29 = int_to_ptr.vmem [resolvable:$true] %s117_s29 }
  0x15   : > { %p263_p0 = scmp.ge.s32.totalorder %s443_s11, 1  ;;  %p122_p1 = scmp.lt.s32.totalorder %s443_s11, 5 }
  0x16   : > { %s104_s2 = scalar_lea.sflag [#allocation3], %s103_s22  ;;  %p337_p2 = pneg %p527_p13 }
  0x17   : > { %s348_s3 = scalar_lea.vmem %s118_s29, 64  ;;  %s445_s4 = smov [#allocation2]  }
  0x18   : > { %p349_p3 = scmp.ne.s32.totalorder %s118_s29, %s348_s3  ;;  %s353_s5 = sshll.u32 %s445_s4, 4  ;;  %s354_s5 = int_to_ptr.vmem [resolvable:$false] %s353_s5 }
  0x19   : > { %s355_s12 = scalar_lea.vmem %s354_s5, 128  ;;  %p356_p7 = scmp.lt.s32.totalorder %s118_s29, %s354_s5 }
  0x1a   : > { %p351_p5 = pnand %p349_p3, %p337_p2  ;;  %p357_p10 = scmp.lt.s32.totalorder %s355_s12, %s348_s3 }
  0x1c   : > { %p352_p6 = pneg %p351_p5  ;;  %p358_p4 = por %p357_p10, %p356_p7 }
  0x1e   : > { %p359_p12 = pnand %p358_p4, %p352_p6 }
  0x20   : > { %362 = shalt.err (!%p359_p12)
}
  0x21   : > { %280 = dma.hbm_to_vmem [thread:$0]  (!%p527_p13), %s115_s27, 64, %s118_s29, %s104_s2  }
  0x22   : > { %p123_p11 = pnand %p263_p0, %p122_p1 }
  0x23   : > { %s542_s13 = sand.u32 (!%p123_p11), 1, %s427_s7  }
  0x24   : > { %126 = sbr.rel (%p123_p11) target bundleno = 66 (0x42), region = 24  ;;  %s264_s15 = sshll.u32 (!%p123_p11), %s542_s13, 2 }
  0x25   : > { %s129_s16 = scalar_lea.sflag (!%p123_p11), [#allocation3], %s542_s13  ;;  %s132_s17 = scalar_lea.vmem (!%p123_p11), [#allocation2], %s264_s15 }
  0x29   : > { %414 = dma.done.wait (%p504_p8), %s129_s16, 64  }
  0x2a   : > { %416 = vsyncadd (%p504_p8), %s129_s16, 4294967232  ;;  %s150_s22 = scalar_lea.vmem [#allocation5], %s264_s15  ;;  %s272_s24 = sshll.u32 %s435_s9, 6  ;;  %v153_v0 = vld [vmem:[%s132_s17] sm:$0xf] }
  0x2b   : > { %s172_s23 = sshll.u32 %s150_s22, 4  ;;  %s170_s27 = scalar_lea.hbm %s596_s1, %s272_s24  ;;  %154 = vst [vmem:[%s150_s22] sm:$0xf] %v153_v0  ;;  %s551_s23 = int_to_ptr.vmem [resolvable:$true] %s172_s23 }
  0x2c   : > { %s156_s28 = scalar_lea.sflag [#allocation4], %s542_s13  ;;  %s363_s18 = scalar_lea.vmem %s551_s23, 64 }
  0x2d   : > { %p364_p8 = scmp.ne.s32.totalorder %s551_s23, %s363_s18  ;;  %s446_s29 = smov [#allocation5]  }
  0x2e   : > { %s367_s30 = sshll.u32 %s446_s29, 4  ;;  %s368_s30 = int_to_ptr.vmem [resolvable:$false] %s367_s30 }
  0x2f   : > { %p365_p11 = pnand %p364_p8, %p508_p9  ;;  %s369_s9 = scalar_lea.vmem %s368_s30, 128 }
  0x30   : > { %p370_p0 = scmp.lt.s32.totalorder %s551_s23, %s368_s30  ;;  %p371_p1 = scmp.lt.s32.totalorder %s369_s9, %s363_s18 }
  0x31   : > { %p366_p13 = pneg %p365_p11 }
  0x32   : > { %p372_p2 = por %p371_p1, %p370_p0 }
  0x34   : > { %p373_p3 = pnand %p372_p2, %p366_p13 }
  0x36   : > { %376 = shalt.err (!%p373_p3)
}
  0x37   : > { %s377_s2 = scalar_lea.hbm %s170_s27, 64  ;;  %s381_s5 = scalar_lea.hbm %s596_s1, 256 }
  0x38   : > { %p378_p5 = scmp.ne.s32.totalorder %s170_s27, %s377_s2  ;;  %p382_p10 = scmp.lt.s32.totalorder %s170_s27, %s596_s1 }
  0x39   : > { %p383_p4 = scmp.lt.s32.totalorder %s381_s5, %s377_s2 }
  0x3a   : > { %p379_p6 = pnand %p378_p5, %p508_p9 }
  0x3b   : > { %p384_p12 = por %p383_p4, %p382_p10 }
  0x3c   : > { %p380_p7 = pneg %p379_p6 }
  0x3e   : > { %p385_p8 = pnand %p384_p12, %p380_p7 }
  0x40   : > { %388 = shalt.err (!%p385_p8)
}
  0x41   : > { %275 = dma.vmem_to_hbm [thread:$0]  (%p508_p9), %s551_s23, 64, %s170_s27, %s156_s28  }
  0x42 PF: > { %p286_p11 = scmp.ge.s32.totalorder %s443_s11, 2  ;;  %s184_s15 = sand.u32 1, %s423_s6  }
  0x43   : > { %p602_p13 = scmp.ne.s32.totalorder %s600_s21, 0  ;;  %s185_s16 = scalar_lea.sflag [#allocation4], %s184_s15 }
  0x45   : > { %p282_p0 = pnand %p286_p11, %p602_p13 }
  0x47   : > { %p283_p1 = pneg %p282_p0 }
  0x49   : > { %418 = dma.done.wait (%p283_p1), %s185_s16, 64  }
  0x4a   : > { %420 = vsyncadd (%p283_p1), %s185_s16, 4294967232  ;;  %s17_s11 = sadd.s32 1, %s443_s11   ;;  %s603_s6 = smov %s427_s7 }
  0x4b   : > { %p14_p2 = scmp.ge.s32.totalorder %s17_s11, 6   ;;  %s604_s7 = smov %s431_s8 }
  0x4c   : > { %s605_s8 = smov %s513_s20  ;;  %s606_s9 = smov %s439_s10 }
  0x4d   : > { %s607_s10 = smov %s609_s14  ;;  %16 = sbr.rel (!%p14_p2) target bundleno = 6 (0x6), region = 69 }
  0x52   :  { %190 = vsyncpa [#allocation3], 1 }
  0x53   :  { %192 = vsyncpa [#allocation3 + $0x1], 1 }
  0x54   :  { %193 = vsyncpa [#allocation4], 1 }
  0x55   :  { %195 = vsyncpa [#allocation4 + $0x1], 1 }

</bundles_post_ra>
